<compile_context>
chip_gen: v7x
topology: tpu7x:2x2x1
jax: 0.10.0
libtpu: 0.0.40
codegen_flags: <defaults>
</compile_context>

<pallas_src>
import functools

import jax
import jax.numpy as jnp
from jax.experimental import pallas as pl
from jax.experimental.pallas import tpu as pltpu

LANE = 128            # padded lane width for every feature / hidden / output dim
F32 = jnp.float32
BF16 = jnp.bfloat16


def _round_up(n, m):
    return ((n + m - 1) // m) * m


def _pad2d(a, rows, cols, dtype=None):
    dtype = a.dtype if dtype is None else dtype
    out = jnp.zeros((rows, cols), dtype)
    return out.at[: a.shape[0], : a.shape[1]].set(a.astype(dtype))


def _vmem_capacity_bytes():
    try:
        info = pltpu.get_tpu_info()
        cap = getattr(info, "vmem_capacity_bytes", None)
        if cap:
            return int(cap)
    except Exception:
        pass
    return 64 * 1024 * 1024  # conservative default (v7x per-TensorCore)


def _row_spec(tn, cols):
    return pl.BlockSpec((tn, cols), lambda i: (i, 0))


def _full_spec(shape, single_buffer=False):
    nd = len(shape)
    idx = lambda *_: (0,) * nd
    if single_buffer:
        # Grid-invariant operand: request a single VMEM buffer instead of the
        # default double buffer (main win: the resident (n_pad, 128) G array).
        return pl.BlockSpec(shape, idx, pipeline_mode=pl.Buffered(1))
    return pl.BlockSpec(shape, idx)


# ----------------------------- kernel bodies --------------------------------

def _embed(x, w1, b1, w2, b2):
    h = jnp.dot(x, w1, preferred_element_type=F32) + b1
    h = jnp.tanh(h)
    h = jnp.dot(h.astype(BF16), w2, preferred_element_type=F32) + b2
    return jnp.tanh(h)


def _pred(h, wp1, bp1, wp2, bp2):
    o = jnp.tanh(jnp.dot(h.astype(BF16), wp1, preferred_element_type=F32) + bp1)
    return jnp.tanh(jnp.dot(o.astype(BF16), wp2, preferred_element_type=F32) + bp2)


def embed_kernel(x_ref, dinv_ref, w1_ref, b1_ref, w2_ref, b2_ref, g_ref):
    # MLP_embed (dropout = identity in eval mode). The output is stored
    # pre-scaled by dinv (G = dinv * H) in bf16 so the GCN aggregation can
    # consume it directly without rescaling the full H every grid step.
    h = _embed(x_ref[...], w1_ref[...], b1_ref[...], w2_ref[...], b2_ref[...])
    g_ref[...] = (dinv_ref[...] * h).astype(BF16)


def gcn_kernel(a_ref, g_ref, dinv_ref, w_ref, b_ref, o_ref):
    # H_out = relu((dinv * (A_bin_stripe @ G_in)) @ W + b);  store G_out = dinv * H_out.
    agg = dinv_ref[...] * jnp.dot(a_ref[...], g_ref[...], preferred_element_type=F32)
    h = jnp.dot(agg.astype(BF16), w_ref[...], preferred_element_type=F32) + b_ref[...]
    h = jnp.maximum(h, 0.0)
    o_ref[...] = (dinv_ref[...] * h).astype(BF16)


def gcn_pred_kernel(a_ref, g_ref, dinv_ref, wg_ref, bg_ref,
                    wp1_ref, bp1_ref, wp2_ref, bp2_ref, pri_ref, o_ref):
    # GCN3 + MLP_pred + residual priors, fused (row-local after aggregation).
    agg = dinv_ref[...] * jnp.dot(a_ref[...], g_ref[...], preferred_element_type=F32)
    h = jnp.dot(agg.astype(BF16), wg_ref[...], preferred_element_type=F32) + bg_ref[...]
    h = jnp.maximum(h, 0.0)
    o = _pred(h, wp1_ref[...], bp1_ref[...], wp2_ref[...], bp2_ref[...])
    o_ref[...] = o + pri_ref[...]


def fused_kernel(x_ref, a_ref, dinv_ref, pri_ref,
                 w1_ref, b1_ref, w2_ref, b2_ref,
                 wg1_ref, bg1_ref, wg2_ref, bg2_ref, wg3_ref, bg3_ref,
                 wp1_ref, bp1_ref, wp2_ref, bp2_ref, o_ref):
    # Whole forward in one kernel: A resident in VMEM (read from HBM once),
    # H never leaves VMEM between layers.
    dinv = dinv_ref[...]
    a = a_ref[...]
    h = _embed(x_ref[...], w1_ref[...], b1_ref[...], w2_ref[...], b2_ref[...])
    for wr, br in ((wg1_ref, bg1_ref), (wg2_ref, bg2_ref), (wg3_ref, bg3_ref)):
        g = (dinv * h).astype(BF16)
        agg = dinv * jnp.dot(a, g, preferred_element_type=F32)
        h = jnp.maximum(
            jnp.dot(agg.astype(BF16), wr[...], preferred_element_type=F32) + br[...],
            0.0)
    o = _pred(h, wp1_ref[...], bp1_ref[...], wp2_ref[...], bp2_ref[...])
    o_ref[...] = o + pri_ref[...]


# ----------------------------- glue -----------------------------------------

def build_gcn_graph(edge_index, num_nodes):
    """Binary (A + I) plus the GCN normalization dinv = deg^{-1/2}.

    Note: .at[dst, src].set(1.0) dedupes repeated edges; PyG's GCNConv
    scatter-adds, so duplicate edges in edge_index would change the result.
    """
    src, dst = edge_index[0], edge_index[1]
    a = jnp.zeros((num_nodes, num_nodes), F32)
    a = a.at[dst, src].set(1.0)             # message src -> dst, aggregated at dst
    a = a + jnp.eye(num_nodes, dtype=F32)   # self loops
    deg = jnp.sum(a, axis=1)
    dinv = jnp.where(deg > 0, 1.0 / jnp.sqrt(deg), 0.0)
    return a, dinv


def _choose_tile(n, vmem_cap):
    """Largest row stripe whose GCN-stage working set fits the VMEM budget while
    keeping >= 2 grid steps (so both v7x TensorCores get work)."""
    budget = max(int(0.55 * vmem_cap), 8 * 1024 * 1024)
    n_pad16 = _round_up(n, 16)
    for tn in (1024, 512, 256, 128, 64, 32, 16):
        if 2 * tn > n_pad16:
            continue
        n_pad = _round_up(n, tn)
        a_bytes = 2 * tn * n_pad * 2        # A stripe, double-buffered, bf16
        g_bytes = 2 * n_pad * LANE * 2      # resident G (worst case double-buffered)
        misc = 4 * tn * LANE * 4 + 2 * 1024 * 1024
        if a_bytes + g_bytes + misc <= budget:
            return tn, n_pad
    # TODO(synk): K-tile the aggregation for graphs too large for a full-width stripe.
    return n_pad16, n_pad16


def _prep_params(params, f_pad):
    w = lambda k, rows: _pad2d(params[k], rows, LANE, BF16)
    b = lambda k: _pad2d(params[k], 1, LANE, F32)
    return {
        "w1": w("w1", f_pad), "b1": b("b1"),
        "w2": w("w2", LANE), "b2": b("b2"),
        "wg1": w("wg1", LANE), "bg1": b("bg1"),
        "wg2": w("wg2", LANE), "bg2": b("bg2"),
        "wg3": w("wg3", LANE), "bg3": b("bg3"),
        "wp1": w("wp1", LANE), "bp1": b("bp1"),
        "wp2": w("wp2", LANE), "bp2": b("bp2"),
    }


def _fused_forward(x_p, a_p, dinv_p, pri_p, p, n_pad, cp):
    f_pad = x_p.shape[1]
    cost = pl.CostEstimate(
        flops=int(2 * 3 * n_pad * n_pad * LANE + 2 * 7 * n_pad * LANE * LANE
                  + 2 * n_pad * f_pad * LANE),
        transcendentals=int(4 * n_pad * LANE),
        bytes_accessed=int(2 * n_pad * n_pad + 2 * n_pad * f_pad + 8 * n_pad * LANE),
    )
    operands = (x_p, a_p, dinv_p, pri_p,
                p["w1"], p["b1"], p["w2"], p["b2"],
                p["wg1"], p["bg1"], p["wg2"], p["bg2"], p["wg3"], p["bg3"],
                p["wp1"], p["bp1"], p["wp2"], p["bp2"])
    return pl.pallas_call(
        fused_kernel,
        grid=(1,),
        in_specs=[_full_spec(o.shape) for o in operands],
        out_specs=_full_spec((n_pad, LANE)),
        out_shape=jax.ShapeDtypeStruct((n_pad, LANE), F32),
        compiler_params=cp,
        cost_estimate=cost,
    )(*operands)


def _tiled_forward(x_p, a_p, dinv_p, pri_p, p, tn, n_pad, f_pad, cp, *, single_buffer):
    grid = (n_pad // tn,)
    inv = functools.partial(_full_spec, single_buffer=single_buffer)

    # ---- stage 1: MLP_embed (row-local), emits G0 = dinv * H0 in bf16 ----
    g = pl.pallas_call(
        embed_kernel,
        grid=grid,
        in_specs=[_row_spec(tn, f_pad), _row_spec(tn, 1),
                  inv(p["w1"].shape), inv(p["b1"].shape),
                  inv(p["w2"].shape), inv(p["b2"].shape)],
        out_specs=_row_spec(tn, LANE),
        out_shape=jax.ShapeDtypeStruct((n_pad, LANE), BF16),
        compiler_params=cp,
    )(x_p, dinv_p, p["w1"], p["b1"], p["w2"], p["b2"])

    # ---- stage 2: GCN1, GCN2 over row stripes of the binary adjacency ----
    gcn_cost = pl.CostEstimate(
        flops=int(2 * n_pad * n_pad * LANE + 2 * n_pad * LANE * LANE),
        transcendentals=0,
        bytes_accessed=int(2 * n_pad * n_pad + 3 * 2 * n_pad * LANE),
    )
    gcn_layer = pl.pallas_call(
        gcn_kernel,
        grid=grid,
        in_specs=[_row_spec(tn, n_pad), inv((n_pad, LANE)), _row_spec(tn, 1),
                  inv((LANE, LANE)), inv((1, LANE))],
        out_specs=_row_spec(tn, LANE),
        out_shape=jax.ShapeDtypeStruct((n_pad, LANE), BF16),
        compiler_params=cp,
        cost_estimate=gcn_cost,
    )
    g = gcn_layer(a_p, g, dinv_p, p["wg1"], p["bg1"])
    g = gcn_layer(a_p, g, dinv_p, p["wg2"], p["bg2"])

    # ---- stage 3: GCN3 + MLP_pred + priors, fused ----
    pred_cost = pl.CostEstimate(
        flops=int(2 * n_pad * n_pad * LANE + 3 * 2 * n_pad * LANE * LANE),
        transcendentals=int(2 * n_pad * LANE),
        bytes_accessed=int(2 * n_pad * n_pad + 2 * n_pad * LANE + 8 * n_pad * LANE),
    )
    return pl.pallas_call(
        gcn_pred_kernel,
        grid=grid,
        in_specs=[_row_spec(tn, n_pad), inv((n_pad, LANE)), _row_spec(tn, 1),
                  inv((LANE, LANE)), inv((1, LANE)),
                  inv((LANE, LANE)), inv((1, LANE)),
                  inv((LANE, LANE)), inv((1, LANE)),
                  _row_spec(tn, LANE)],
        out_specs=_row_spec(tn, LANE),
        out_shape=jax.ShapeDtypeStruct((n_pad, LANE), F32),
        compiler_params=cp,
        cost_estimate=pred_cost,
    )(a_p, g, dinv_p, p["wg3"], p["bg3"],
      p["wp1"], p["bp1"], p["wp2"], p["bp2"], pri_p)


def temporal_skip_forward(x, edge_index, priors, params, *, force_tiled=False):
    n, f = x.shape
    out_dim = params["wp2"].shape[1]
    f_pad = _round_up(f, LANE)
    vmem_cap = _vmem_capacity_bytes()

    a_bin, dinv = build_gcn_graph(edge_index, n)

    n_pad16 = _round_up(n, 16)
    fused_bytes = (2 * n_pad16 * n_pad16 * 2        # A (assume double-buffered)
                   + 2 * n_pad16 * f_pad * 2
                   + 8 * n_pad16 * LANE * 4
                   + 16 * LANE * LANE * 2)
    use_fused = ((not force_tiled) and n_pad16 <= 1024
                 and fused_bytes <= int(0.3 * vmem_cap))

    if use_fused:
        tn = n_pad = n_pad16
    else:
        tn, n_pad = _choose_tile(n, vmem_cap)

    # ---- pad & cast operands (zero padding is exact: padded A rows/cols are 0,
    #      padded weight rows/cols are 0, padded dinv rows are 0) ----
    a_p = _pad2d(a_bin, n_pad, n_pad, BF16)          # binary (A+I): exact in bf16
    x_p = _pad2d(x, n_pad, f_pad, BF16)
    pri_p = _pad2d(priors, n_pad, LANE, F32)
    dinv_p = jnp.zeros((n_pad, 1), F32).at[:n, 0].set(dinv)
    p = _prep_params(params, f_pad)

    # ~96 MiB on 128 MiB chips (v5e/v6e), ~48 MiB on 64 MiB v7x.
    vmem_limit = int(min(0.75 * vmem_cap, 100 * 1024 * 1024))
    cp = pltpu.CompilerParams(dimension_semantics=("parallel",),
                              vmem_limit_bytes=vmem_limit)

    if use_fused:
        out_p = _fused_forward(x_p, a_p, dinv_p, pri_p, p, n_pad, cp)
    else:
        try:
            out_p = _tiled_forward(x_p, a_p, dinv_p, pri_p, p, tn, n_pad, f_pad,
                                   cp, single_buffer=True)
        except Exception:
            # pipeline_mode=pl.Buffered(1) not supported on this jax version.
            out_p = _tiled_forward(x_p, a_p, dinv_p, pri_p, p, tn, n_pad, f_pad,
                                   cp, single_buffer=False)
    return out_p[:n, :out_dim]


# ----------------------------- reference & params ---------------------------

def init_params(key, num_node_features, output_dim):
    """Deterministic synthetic weights. Linear weights stored as (in, out) so x @ W."""
    ks = jax.random.split(key, 14)

    def w(k, i, o):
        return jax.random.normal(k, (i, o), F32) * 0.1

    def b(k, o):
        return jax.random.normal(k, (1, o), F32) * 0.01

    return {
        # MLP_embed(64, F, 32)
        "w1": w(ks[0], num_node_features, 64), "b1": b(ks[1], 64),
        "w2": w(ks[2], 64, 32),                "b2": b(ks[3], 32),
        # GCNConv(32, 32) x3
        "wg1": w(ks[4], 32, 32), "bg1": b(ks[5], 32),
        "wg2": w(ks[6], 32, 32), "bg2": b(ks[7], 32),
        "wg3": w(ks[8], 32, 32), "bg3": b(ks[9], 32),
        # MLP_pred(32, 32, output_dim)
        "wp1": w(ks[10], 32, 32),         "bp1": b(ks[11], 32),
        "wp2": w(ks[12], 32, output_dim), "bp2": b(ks[13], output_dim),
    }


def reference_forward(x, edge_index, priors, params):
    """Pure-JAX f32 reference for sanity checking."""
    a_bin, dinv = build_gcn_graph(edge_index, x.shape[0])
    a_hat = dinv[:, None] * a_bin * dinv[None, :]
    h = jnp.tanh(x @ params["w1"] + params["b1"])
    h = jnp.tanh(h @ params["w2"] + params["b2"])
    for wk, bk in (("wg1", "bg1"), ("wg2", "bg2"), ("wg3", "bg3")):
        h = jnp.maximum(a_hat @ (h @ params[wk]) + params[bk], 0.0)
    o = jnp.tanh(h @ params["wp1"] + params["bp1"])
    o = jnp.tanh(o @ params["wp2"] + params["bp2"])
    return o + priors


if __name__ == "__main__":
    key = jax.random.PRNGKey(0)
    k_x, k_p, k_w, k_x2, k_p2 = jax.random.split(key, 5)

    num_node_features = 16
    output_dim = 8
    params = init_params(k_w, num_node_features, output_dim)

    def ring_graph(num_nodes):
        src = jnp.arange(num_nodes, dtype=jnp.int32)
        dst = (src + 1) % num_nodes
        return jnp.stack([jnp.concatenate([src, dst]),
                          jnp.concatenate([dst, src])], axis=0)

    # ---- small graph: exercises the fused single-kernel path ----
    n_small = 16
    x = jax.random.normal(k_x, (n_small, num_node_features), F32)
    priors = jax.random.normal(k_p, (n_small, output_dim), F32)
    ei = ring_graph(n_small)

    out = jax.block_until_ready(temporal_skip_forward(x, ei, priors, params))
    ref = reference_forward(x, ei, priors, params)
    assert out.shape == (n_small, output_dim)
    # bf16 activations/weights on the MXU -> looser tolerance than pure-f32
    assert jnp.allclose(out, ref, atol=5e-2, rtol=5e-2), \
        float(jnp.max(jnp.abs(out - ref)))

    # ---- larger graph: exercises the row-tiled multi-stage path ----
    n_big = 384
    x2 = jax.random.normal(k_x2, (n_big, num_node_features), F32)
    priors2 = jax.random.normal(k_p2, (n_big, output_dim), F32)
    ei2 = ring_graph(n_big)

    out2 = jax.block_until_ready(
        temporal_skip_forward(x2, ei2, priors2, params, force_tiled=True))
    ref2 = reference_forward(x2, ei2, priors2, params)
    assert out2.shape == (n_big, output_dim)
    assert jnp.allclose(out2, ref2, atol=5e-2, rtol=5e-2), \
        float(jnp.max(jnp.abs(out2 - ref2)))

    print("KERNEL_OK")
</pallas_src>

<mosaic_0001>
module attributes {stable_mosaic.version = 11 : i64} {
  func.func @fused_kernel(%arg0: i32, %arg1: memref<16x128xbf16, #tpu.memory_space<vmem>>, %arg2: memref<16x16xbf16, #tpu.memory_space<vmem>>, %arg3: memref<16x1xf32, #tpu.memory_space<vmem>>, %arg4: memref<16x128xf32, #tpu.memory_space<vmem>>, %arg5: memref<128x128xbf16, #tpu.memory_space<vmem>>, %arg6: memref<1x128xf32, #tpu.memory_space<vmem>>, %arg7: memref<128x128xbf16, #tpu.memory_space<vmem>>, %arg8: memref<1x128xf32, #tpu.memory_space<vmem>>, %arg9: memref<128x128xbf16, #tpu.memory_space<vmem>>, %arg10: memref<1x128xf32, #tpu.memory_space<vmem>>, %arg11: memref<128x128xbf16, #tpu.memory_space<vmem>>, %arg12: memref<1x128xf32, #tpu.memory_space<vmem>>, %arg13: memref<128x128xbf16, #tpu.memory_space<vmem>>, %arg14: memref<1x128xf32, #tpu.memory_space<vmem>>, %arg15: memref<128x128xbf16, #tpu.memory_space<vmem>>, %arg16: memref<1x128xf32, #tpu.memory_space<vmem>>, %arg17: memref<128x128xbf16, #tpu.memory_space<vmem>>, %arg18: memref<1x128xf32, #tpu.memory_space<vmem>>, %arg19: memref<16x128xf32, #tpu.memory_space<vmem>>) attributes {dimension_semantics = [#tpu.dimension_semantics<parallel>], iteration_bounds = array<i64: 1>, scalar_prefetch = 0 : i64, scratch_operands = 0 : i64, tpu.core_type = #tpu.core_type<tc>, window_params = [{pipeline_mode = #tpu.pipeline_mode<synchronous>, transform_indices = @transform_0, window_bounds = array<i64: 16, 128>}, {pipeline_mode = #tpu.pipeline_mode<synchronous>, transform_indices = @transform_1, window_bounds = array<i64: 16, 16>}, {pipeline_mode = #tpu.pipeline_mode<synchronous>, transform_indices = @transform_2, window_bounds = array<i64: 16, 1>}, {pipeline_mode = #tpu.pipeline_mode<synchronous>, transform_indices = @transform_3, window_bounds = array<i64: 16, 128>}, {pipeline_mode = #tpu.pipeline_mode<synchronous>, transform_indices = @transform_4, window_bounds = array<i64: 128, 128>}, {pipeline_mode = #tpu.pipeline_mode<synchronous>, transform_indices = @transform_5, window_bounds = array<i64: 1, 128>}, {pipeline_mode = #tpu.pipeline_mode<synchronous>, transform_indices = @transform_6, window_bounds = array<i64: 128, 128>}, {pipeline_mode = #tpu.pipeline_mode<synchronous>, transform_indices = @transform_7, window_bounds = array<i64: 1, 128>}, {pipeline_mode = #tpu.pipeline_mode<synchronous>, transform_indices = @transform_8, window_bounds = array<i64: 128, 128>}, {pipeline_mode = #tpu.pipeline_mode<synchronous>, transform_indices = @transform_9, window_bounds = array<i64: 1, 128>}, {pipeline_mode = #tpu.pipeline_mode<synchronous>, transform_indices = @transform_10, window_bounds = array<i64: 128, 128>}, {pipeline_mode = #tpu.pipeline_mode<synchronous>, transform_indices = @transform_11, window_bounds = array<i64: 1, 128>}, {pipeline_mode = #tpu.pipeline_mode<synchronous>, transform_indices = @transform_12, window_bounds = array<i64: 128, 128>}, {pipeline_mode = #tpu.pipeline_mode<synchronous>, transform_indices = @transform_13, window_bounds = array<i64: 1, 128>}, {pipeline_mode = #tpu.pipeline_mode<synchronous>, transform_indices = @transform_14, window_bounds = array<i64: 128, 128>}, {pipeline_mode = #tpu.pipeline_mode<synchronous>, transform_indices = @transform_15, window_bounds = array<i64: 1, 128>}, {pipeline_mode = #tpu.pipeline_mode<synchronous>, transform_indices = @transform_16, window_bounds = array<i64: 128, 128>}, {pipeline_mode = #tpu.pipeline_mode<synchronous>, transform_indices = @transform_17, window_bounds = array<i64: 1, 128>}, {pipeline_mode = #tpu.pipeline_mode<synchronous>, transform_indices = @transform_18, window_bounds = array<i64: 16, 128>}]} {
    %c0 = arith.constant 0 : index
    %c0_0 = arith.constant 0 : index
    %0 = vector.load %arg3[%c0, %c0_0] : memref<16x1xf32, #tpu.memory_space<vmem>>, vector<16x1xf32>
    %c0_1 = arith.constant 0 : index
    %c0_2 = arith.constant 0 : index
    %1 = vector.load %arg2[%c0_1, %c0_2] : memref<16x16xbf16, #tpu.memory_space<vmem>>, vector<16x16xbf16>
    %c0_3 = arith.constant 0 : index
    %c0_4 = arith.constant 0 : index
    %2 = vector.load %arg1[%c0_3, %c0_4] : memref<16x128xbf16, #tpu.memory_space<vmem>>, vector<16x128xbf16>
    %c0_5 = arith.constant 0 : index
    %c0_6 = arith.constant 0 : index
    %3 = vector.load %arg5[%c0_5, %c0_6] : memref<128x128xbf16, #tpu.memory_space<vmem>>, vector<128x128xbf16>
    %c0_7 = arith.constant 0 : index
    %c0_8 = arith.constant 0 : index
    %4 = vector.load %arg6[%c0_7, %c0_8] : memref<1x128xf32, #tpu.memory_space<vmem>>, vector<1x128xf32>
    %c0_9 = arith.constant 0 : index
    %c0_10 = arith.constant 0 : index
    %5 = vector.load %arg7[%c0_9, %c0_10] : memref<128x128xbf16, #tpu.memory_space<vmem>>, vector<128x128xbf16>
    %c0_11 = arith.constant 0 : index
    %c0_12 = arith.constant 0 : index
    %6 = vector.load %arg8[%c0_11, %c0_12] : memref<1x128xf32, #tpu.memory_space<vmem>>, vector<1x128xf32>
    %cst = arith.constant dense<0.000000e+00> : vector<16x128xf32>
    %7 = tpu.matmul %2, %3, %cst {dimension_numbers = #tpu.dot_dimension_numbers<[1], [0], [0], [1], [0, 0, 1, 1], [], []>} : vector<16x128xbf16>, vector<128x128xbf16>, vector<16x128xf32> -> vector<16x128xf32>
    %8 = vector.broadcast %4 : vector<1x128xf32> to vector<16x128xf32>
    %9 = arith.addf %7, %8 : vector<16x128xf32>
    %10 = math.tanh %9 : vector<16x128xf32>
    %11 = arith.truncf %10 : vector<16x128xf32> to vector<16x128xbf16>
    %cst_13 = arith.constant dense<0.000000e+00> : vector<16x128xf32>
    %12 = tpu.matmul %11, %5, %cst_13 {dimension_numbers = #tpu.dot_dimension_numbers<[1], [0], [0], [1], [0, 0, 1, 1], [], []>} : vector<16x128xbf16>, vector<128x128xbf16>, vector<16x128xf32> -> vector<16x128xf32>
    %13 = vector.broadcast %6 : vector<1x128xf32> to vector<16x128xf32>
    %14 = arith.addf %12, %13 : vector<16x128xf32>
    %15 = math.tanh %14 : vector<16x128xf32>
    %16 = vector.broadcast %0 : vector<16x1xf32> to vector<16x128xf32>
    %17 = arith.mulf %16, %15 : vector<16x128xf32>
    %18 = arith.truncf %17 : vector<16x128xf32> to vector<16x128xbf16>
    %cst_14 = arith.constant dense<0.000000e+00> : vector<16x128xf32>
    %19 = tpu.matmul %1, %18, %cst_14 {dimension_numbers = #tpu.dot_dimension_numbers<[1], [0], [0], [1], [0, 0, 1, 1], [], []>} : vector<16x16xbf16>, vector<16x128xbf16>, vector<16x128xf32> -> vector<16x128xf32>
    %20 = vector.broadcast %0 : vector<16x1xf32> to vector<16x128xf32>
    %21 = arith.mulf %20, %19 : vector<16x128xf32>
    %22 = arith.truncf %21 : vector<16x128xf32> to vector<16x128xbf16>
    %c0_15 = arith.constant 0 : index
    %c0_16 = arith.constant 0 : index
    %23 = vector.load %arg9[%c0_15, %c0_16] : memref<128x128xbf16, #tpu.memory_space<vmem>>, vector<128x128xbf16>
    %cst_17 = arith.constant dense<0.000000e+00> : vector<16x128xf32>
    %24 = tpu.matmul %22, %23, %cst_17 {dimension_numbers = #tpu.dot_dimension_numbers<[1], [0], [0], [1], [0, 0, 1, 1], [], []>} : vector<16x128xbf16>, vector<128x128xbf16>, vector<16x128xf32> -> vector<16x128xf32>
    %c0_18 = arith.constant 0 : index
    %c0_19 = arith.constant 0 : index
    %25 = vector.load %arg10[%c0_18, %c0_19] : memref<1x128xf32, #tpu.memory_space<vmem>>, vector<1x128xf32>
    %26 = vector.broadcast %25 : vector<1x128xf32> to vector<16x128xf32>
    %27 = arith.addf %24, %26 : vector<16x128xf32>
    %cst_20 = arith.constant 0.000000e+00 : f32
    %28 = vector.broadcast %cst_20 : f32 to vector<16x128xf32>
    %29 = arith.maximumf %27, %28 : vector<16x128xf32>
    %30 = vector.broadcast %0 : vector<16x1xf32> to vector<16x128xf32>
    %31 = arith.mulf %30, %29 : vector<16x128xf32>
    %32 = arith.truncf %31 : vector<16x128xf32> to vector<16x128xbf16>
    %cst_21 = arith.constant dense<0.000000e+00> : vector<16x128xf32>
    %33 = tpu.matmul %1, %32, %cst_21 {dimension_numbers = #tpu.dot_dimension_numbers<[1], [0], [0], [1], [0, 0, 1, 1], [], []>} : vector<16x16xbf16>, vector<16x128xbf16>, vector<16x128xf32> -> vector<16x128xf32>
    %34 = vector.broadcast %0 : vector<16x1xf32> to vector<16x128xf32>
    %35 = arith.mulf %34, %33 : vector<16x128xf32>
    %36 = arith.truncf %35 : vector<16x128xf32> to vector<16x128xbf16>
    %c0_22 = arith.constant 0 : index
    %c0_23 = arith.constant 0 : index
    %37 = vector.load %arg11[%c0_22, %c0_23] : memref<128x128xbf16, #tpu.memory_space<vmem>>, vector<128x128xbf16>
    %cst_24 = arith.constant dense<0.000000e+00> : vector<16x128xf32>
    %38 = tpu.matmul %36, %37, %cst_24 {dimension_numbers = #tpu.dot_dimension_numbers<[1], [0], [0], [1], [0, 0, 1, 1], [], []>} : vector<16x128xbf16>, vector<128x128xbf16>, vector<16x128xf32> -> vector<16x128xf32>
    %c0_25 = arith.constant 0 : index
    %c0_26 = arith.constant 0 : index
    %39 = vector.load %arg12[%c0_25, %c0_26] : memref<1x128xf32, #tpu.memory_space<vmem>>, vector<1x128xf32>
    %40 = vector.broadcast %39 : vector<1x128xf32> to vector<16x128xf32>
    %41 = arith.addf %38, %40 : vector<16x128xf32>
    %cst_27 = arith.constant 0.000000e+00 : f32
    %42 = vector.broadcast %cst_27 : f32 to vector<16x128xf32>
    %43 = arith.maximumf %41, %42 : vector<16x128xf32>
    %44 = vector.broadcast %0 : vector<16x1xf32> to vector<16x128xf32>
    %45 = arith.mulf %44, %43 : vector<16x128xf32>
    %46 = arith.truncf %45 : vector<16x128xf32> to vector<16x128xbf16>
    %cst_28 = arith.constant dense<0.000000e+00> : vector<16x128xf32>
    %47 = tpu.matmul %1, %46, %cst_28 {dimension_numbers = #tpu.dot_dimension_numbers<[1], [0], [0], [1], [0, 0, 1, 1], [], []>} : vector<16x16xbf16>, vector<16x128xbf16>, vector<16x128xf32> -> vector<16x128xf32>
    %48 = vector.broadcast %0 : vector<16x1xf32> to vector<16x128xf32>
    %49 = arith.mulf %48, %47 : vector<16x128xf32>
    %50 = arith.truncf %49 : vector<16x128xf32> to vector<16x128xbf16>
    %c0_29 = arith.constant 0 : index
    %c0_30 = arith.constant 0 : index
    %51 = vector.load %arg13[%c0_29, %c0_30] : memref<128x128xbf16, #tpu.memory_space<vmem>>, vector<128x128xbf16>
    %cst_31 = arith.constant dense<0.000000e+00> : vector<16x128xf32>
    %52 = tpu.matmul %50, %51, %cst_31 {dimension_numbers = #tpu.dot_dimension_numbers<[1], [0], [0], [1], [0, 0, 1, 1], [], []>} : vector<16x128xbf16>, vector<128x128xbf16>, vector<16x128xf32> -> vector<16x128xf32>
    %c0_32 = arith.constant 0 : index
    %c0_33 = arith.constant 0 : index
    %53 = vector.load %arg14[%c0_32, %c0_33] : memref<1x128xf32, #tpu.memory_space<vmem>>, vector<1x128xf32>
    %54 = vector.broadcast %53 : vector<1x128xf32> to vector<16x128xf32>
    %55 = arith.addf %52, %54 : vector<16x128xf32>
    %cst_34 = arith.constant 0.000000e+00 : f32
    %56 = vector.broadcast %cst_34 : f32 to vector<16x128xf32>
    %57 = arith.maximumf %55, %56 : vector<16x128xf32>
    %c0_35 = arith.constant 0 : index
    %c0_36 = arith.constant 0 : index
    %58 = vector.load %arg15[%c0_35, %c0_36] : memref<128x128xbf16, #tpu.memory_space<vmem>>, vector<128x128xbf16>
    %c0_37 = arith.constant 0 : index
    %c0_38 = arith.constant 0 : index
    %59 = vector.load %arg16[%c0_37, %c0_38] : memref<1x128xf32, #tpu.memory_space<vmem>>, vector<1x128xf32>
    %c0_39 = arith.constant 0 : index
    %c0_40 = arith.constant 0 : index
    %60 = vector.load %arg17[%c0_39, %c0_40] : memref<128x128xbf16, #tpu.memory_space<vmem>>, vector<128x128xbf16>
    %c0_41 = arith.constant 0 : index
    %c0_42 = arith.constant 0 : index
    %61 = vector.load %arg18[%c0_41, %c0_42] : memref<1x128xf32, #tpu.memory_space<vmem>>, vector<1x128xf32>
    %62 = arith.truncf %57 : vector<16x128xf32> to vector<16x128xbf16>
    %cst_43 = arith.constant dense<0.000000e+00> : vector<16x128xf32>
    %63 = tpu.matmul %62, %58, %cst_43 {dimension_numbers = #tpu.dot_dimension_numbers<[1], [0], [0], [1], [0, 0, 1, 1], [], []>} : vector<16x128xbf16>, vector<128x128xbf16>, vector<16x128xf32> -> vector<16x128xf32>
    %64 = vector.broadcast %59 : vector<1x128xf32> to vector<16x128xf32>
    %65 = arith.addf %63, %64 : vector<16x128xf32>
    %66 = math.tanh %65 : vector<16x128xf32>
    %67 = arith.truncf %66 : vector<16x128xf32> to vector<16x128xbf16>
    %cst_44 = arith.constant dense<0.000000e+00> : vector<16x128xf32>
    %68 = tpu.matmul %67, %60, %cst_44 {dimension_numbers = #tpu.dot_dimension_numbers<[1], [0], [0], [1], [0, 0, 1, 1], [], []>} : vector<16x128xbf16>, vector<128x128xbf16>, vector<16x128xf32> -> vector<16x128xf32>
    %69 = vector.broadcast %61 : vector<1x128xf32> to vector<16x128xf32>
    %70 = arith.addf %68, %69 : vector<16x128xf32>
    %71 = math.tanh %70 : vector<16x128xf32>
    %c0_45 = arith.constant 0 : index
    %c0_46 = arith.constant 0 : index
    %72 = vector.load %arg4[%c0_45, %c0_46] : memref<16x128xf32, #tpu.memory_space<vmem>>, vector<16x128xf32>
    %73 = arith.addf %71, %72 : vector<16x128xf32>
    %c0_47 = arith.constant 0 : index
    %c0_48 = arith.constant 0 : index
    %74 = vector.load %arg19[%c0_47, %c0_48] : memref<16x128xf32, #tpu.memory_space<vmem>>, vector<16x128xf32>
    tpu.vector_store %arg19[%c0_47, %c0_48], %73 {strides = array<i32>} : memref<16x128xf32, #tpu.memory_space<vmem>>, vector<16x128xf32>,
    return
  }
  func.func @transform_0(%arg0: i32) -> (i32, i32) {
    %c0_i32 = arith.constant 0 : i32
    %c0_i32_0 = arith.constant 0 : i32
    %c0_i32_1 = arith.constant 0 : i32
    return %c0_i32, %c0_i32_0 : i32, i32
  }
  func.func @transform_1(%arg0: i32) -> (i32, i32) {
    %c0_i32 = arith.constant 0 : i32
    %c0_i32_0 = arith.constant 0 : i32
    %c0_i32_1 = arith.constant 0 : i32
    return %c0_i32, %c0_i32_0 : i32, i32
  }
  func.func @transform_2(%arg0: i32) -> (i32, i32) {
    %c0_i32 = arith.constant 0 : i32
    %c0_i32_0 = arith.constant 0 : i32
    %c0_i32_1 = arith.constant 0 : i32
    return %c0_i32, %c0_i32_0 : i32, i32
  }
  func.func @transform_3(%arg0: i32) -> (i32, i32) {
    %c0_i32 = arith.constant 0 : i32
    %c0_i32_0 = arith.constant 0 : i32
    %c0_i32_1 = arith.constant 0 : i32
    return %c0_i32, %c0_i32_0 : i32, i32
  }
  func.func @transform_4(%arg0: i32) -> (i32, i32) {
    %c0_i32 = arith.constant 0 : i32
    %c0_i32_0 = arith.constant 0 : i32
    %c0_i32_1 = arith.constant 0 : i32
    return %c0_i32, %c0_i32_0 : i32, i32
  }
  func.func @transform_5(%arg0: i32) -> (i32, i32) {
    %c0_i32 = arith.constant 0 : i32
    %c0_i32_0 = arith.constant 0 : i32
    %c0_i32_1 = arith.constant 0 : i32
    return %c0_i32, %c0_i32_0 : i32, i32
  }
  func.func @transform_6(%arg0: i32) -> (i32, i32) {
    %c0_i32 = arith.constant 0 : i32
    %c0_i32_0 = arith.constant 0 : i32
    %c0_i32_1 = arith.constant 0 : i32
    return %c0_i32, %c0_i32_0 : i32, i32
  }
  func.func @transform_7(%arg0: i32) -> (i32, i32) {
    %c0_i32 = arith.constant 0 : i32
    %c0_i32_0 = arith.constant 0 : i32
    %c0_i32_1 = arith.constant 0 : i32
    return %c0_i32, %c0_i32_0 : i32, i32
  }
  func.func @transform_8(%arg0: i32) -> (i32, i32) {
    %c0_i32 = arith.constant 0 : i32
    %c0_i32_0 = arith.constant 0 : i32
    %c0_i32_1 = arith.constant 0 : i32
    return %c0_i32, %c0_i32_0 : i32, i32
  }
  func.func @transform_9(%arg0: i32) -> (i32, i32) {
    %c0_i32 = arith.constant 0 : i32
    %c0_i32_0 = arith.constant 0 : i32
    %c0_i32_1 = arith.constant 0 : i32
    return %c0_i32, %c0_i32_0 : i32, i32
  }
  func.func @transform_10(%arg0: i32) -> (i32, i32) {
    %c0_i32 = arith.constant 0 : i32
    %c0_i32_0 = arith.constant 0 : i32
    %c0_i32_1 = arith.constant 0 : i32
    return %c0_i32, %c0_i32_0 : i32, i32
  }
  func.func @transform_11(%arg0: i32) -> (i32, i32) {
    %c0_i32 = arith.constant 0 : i32
    %c0_i32_0 = arith.constant 0 : i32
    %c0_i32_1 = arith.constant 0 : i32
    return %c0_i32, %c0_i32_0 : i32, i32
  }
  func.func @transform_12(%arg0: i32) -> (i32, i32) {
    %c0_i32 = arith.constant 0 : i32
    %c0_i32_0 = arith.constant 0 : i32
    %c0_i32_1 = arith.constant 0 : i32
    return %c0_i32, %c0_i32_0 : i32, i32
  }
  func.func @transform_13(%arg0: i32) -> (i32, i32) {
    %c0_i32 = arith.constant 0 : i32
    %c0_i32_0 = arith.constant 0 : i32
    %c0_i32_1 = arith.constant 0 : i32
    return %c0_i32, %c0_i32_0 : i32, i32
  }
  func.func @transform_14(%arg0: i32) -> (i32, i32) {
    %c0_i32 = arith.constant 0 : i32
    %c0_i32_0 = arith.constant 0 : i32
    %c0_i32_1 = arith.constant 0 : i32
    return %c0_i32, %c0_i32_0 : i32, i32
  }
  func.func @transform_15(%arg0: i32) -> (i32, i32) {
    %c0_i32 = arith.constant 0 : i32
    %c0_i32_0 = arith.constant 0 : i32
    %c0_i32_1 = arith.constant 0 : i32
    return %c0_i32, %c0_i32_0 : i32, i32
  }
  func.func @transform_16(%arg0: i32) -> (i32, i32) {
    %c0_i32 = arith.constant 0 : i32
    %c0_i32_0 = arith.constant 0 : i32
    %c0_i32_1 = arith.constant 0 : i32
    return %c0_i32, %c0_i32_0 : i32, i32
  }
  func.func @transform_17(%arg0: i32) -> (i32, i32) {
    %c0_i32 = arith.constant 0 : i32
    %c0_i32_0 = arith.constant 0 : i32
    %c0_i32_1 = arith.constant 0 : i32
    return %c0_i32, %c0_i32_0 : i32, i32
  }
  func.func @transform_18(%arg0: i32) -> (i32, i32) {
    %c0_i32 = arith.constant 0 : i32
    %c0_i32_0 = arith.constant 0 : i32
    %c0_i32_1 = arith.constant 0 : i32
    return %c0_i32, %c0_i32_0 : i32, i32
  }
}

</mosaic_0001>

<bundles_post_ra>
// kernel: tpu_custom_call.1
= control target key start
LH: loop header
LB: loop body
LE: loop exit
PB: predicated region body
PF: predicated region fallthrough
CT: control target
= control target key end

     0   :  { %s2246_s0 = inlined_call_operand.hbm [shape: bf16[16,128], index: 0, kind: input, shape index: {}]   ;;  %s2247_s1 = inlined_call_operand.hbm [shape: bf16[16,16], index: 1, kind: input, shape index: {}]   ;;  %s2248_s2 = inlined_call_operand.vmem [shape: f32[16,1], index: 2, kind: input, shape index: {}]   ;;  %s2249_s3 = inlined_call_operand.hbm [shape: f32[16,128], index: 3, kind: input, shape index: {}]   ;;  %s2250_s4 = inlined_call_operand.hbm [shape: bf16[128,128], index: 4, kind: input, shape index: {}]   ;;  %s2251_s5 = inlined_call_operand.vmem [shape: f32[1,128], index: 5, kind: input, shape index: {}]   ;;  %s2252_s6 = inlined_call_operand.hbm [shape: bf16[128,128], index: 6, kind: input, shape index: {}]   ;;  %s2253_s7 = inlined_call_operand.vmem [shape: f32[1,128], index: 7, kind: input, shape index: {}]   ;;  %s2254_s8 = inlined_call_operand.hbm [shape: bf16[128,128], index: 8, kind: input, shape index: {}]   ;;  %s2255_s9 = inlined_call_operand.vmem [shape: f32[1,128], index: 9, kind: input, shape index: {}]   ;;  %s2256_s10 = inlined_call_operand.hbm [shape: bf16[128,128], index: 10, kind: input, shape index: {}]   ;;  %s2257_s11 = inlined_call_operand.vmem [shape: f32[1,128], index: 11, kind: input, shape index: {}]   ;;  %s2258_s12 = inlined_call_operand.hbm [shape: bf16[128,128], index: 12, kind: input, shape index: {}]   ;;  %s2259_s13 = inlined_call_operand.vmem [shape: f32[1,128], index: 13, kind: input, shape index: {}]   ;;  %s2260_s14 = inlined_call_operand.vmem [shape: bf16[128,128], index: 14, kind: input, shape index: {}]   ;;  %s2261_s15 = inlined_call_operand.vmem [shape: f32[1,128], index: 15, kind: input, shape index: {}]   ;;  %s2262_s16 = inlined_call_operand.hbm [shape: bf16[128,128], index: 16, kind: input, shape index: {}]   ;;  %s2263_s17 = inlined_call_operand.vmem [shape: f32[1,128], index: 17, kind: input, shape index: {}]   ;;  %s2264_s18 = inlined_call_operand.hbm [shape: f32[16,128], index: 18, kind: output, shape index: {}]  }
   0x1   :  { %2269 = sst [smem:[#allocation24_spill]] %s2246_s0 }
   0x2   :  { %2270 = sst [smem:[#allocation25_spill]] %s2247_s1 }
   0x3   :  { %2271 = sst [smem:[#allocation26_spill]] %s2248_s2 }
   0x4   :  { %2272 = sst [smem:[#allocation27_spill]] %s2264_s18 }
   0x5   :  { %23 = vsyncpa [#allocation3], 0 }
   0x6   :  { %24 = vsyncpa [#allocation6], 0 }
   0x7   :  { %25 = vsyncpa [#allocation9], 0 }
   0x8   :  { %26 = vsyncpa [#allocation12], 0 }
   0x9   :  { %27 = vsyncpa [#allocation15], 0 }
   0xa   :  { %28 = vsyncpa [#allocation4], 0  ;;  %s1802_s27 = smov [#allocation5]   ;;  %s1803_s29 = smov [#allocation8]  }
   0xb   :  { %s46_s28 = sshll.u32 %s1802_s27, 4  ;;  %s72_s30 = sshll.u32 %s1803_s29, 4  ;;  %s47_s28 = int_to_ptr.vmem [resolvable:$true] %s46_s28  ;;  %s1914_s30 = int_to_ptr.vmem [resolvable:$true] %s72_s30 }
   0xc   :  { %s2273_s1 = sld [smem:[#allocation25_spill]] }
  0x12   :  { %s1570_s20 = scalar_lea.hbm %s2273_s1, 128 }
  0x13   :  { %p1571_p0 = scmp.ne.s32.totalorder %s2273_s1, %s1570_s20  ;;  %p1574_p1 = scmp.lt.u32.totalorder %s1570_s20, %s2273_s1 }
  0x15   :  { %p1576_p2 = pnand %p1574_p1, %p1571_p0 }
  0x17   :  { %1579 = shalt.err (!%p1576_p2)
}
  0x18   :  { %s1580_s24 = scalar_lea.vmem %s47_s28, 128  ;;  %p1585_p4 = scmp.lt.s32.totalorder %s47_s28, %s47_s28 }
  0x19   :  { %p1581_p3 = scmp.ne.s32.totalorder %s47_s28, %s1580_s24  ;;  %p1586_p5 = scmp.lt.s32.totalorder %s1580_s24, %s1580_s24 }
  0x1b   :  { %p1587_p6 = por %p1586_p5, %p1585_p4 }
  0x1d   :  { %p1588_p7 = pnand %p1587_p6, %p1581_p3 }
  0x1f   :  { %1591 = shalt.err (!%p1588_p7)
}
  0x20   :  { %s1804_s25 = smov 64   ;;  %s1805_s26 = smov 4  }
  0x21   :  { %52 = dma.hbm_to_vmem [thread:$0]  %s2273_s1, 128, %s47_s28, [#allocation6], %s1804_s25, %s1804_s25, %s1805_s26  }
  0x22   :  { %s1592_s20 = scalar_lea.hbm %s2250_s4, 1024 }
  0x23   :  { %p1593_p8 = scmp.ne.s32.totalorder %s2250_s4, %s1592_s20  ;;  %p1596_p9 = scmp.lt.u32.totalorder %s1592_s20, %s2250_s4 }
  0x25   :  { %p1598_p10 = pnand %p1596_p9, %p1593_p8 }
  0x27   :  { %1601 = shalt.err (!%p1598_p10)
}
  0x28   :  { %s1602_s24 = scalar_lea.vmem %s1914_s30, 1024  ;;  %p1607_p12 = scmp.lt.s32.totalorder %s1914_s30, %s1914_s30 }
  0x29   :  { %p1603_p11 = scmp.ne.s32.totalorder %s1914_s30, %s1602_s24  ;;  %p1608_p13 = scmp.lt.s32.totalorder %s1602_s24, %s1602_s24 }
  0x2b   :  { %p1609_p0 = por %p1608_p13, %p1607_p12 }
  0x2d   :  { %p1610_p1 = pnand %p1609_p0, %p1603_p11 }
  0x2f   :  { %1613 = shalt.err (!%p1610_p1)
}
  0x30   :  { %78 = dma.hbm_to_vmem [thread:$0]  %s2250_s4, 1024, %s1914_s30, [#allocation9], %s1804_s25, %s1804_s25, %s1805_s26  }
  0x31   :  { %s1806_s27 = smov [#allocation11]   ;;  %s1807_s0 = smov [#allocation14]  }
  0x32   :  { %s100_s29 = sshll.u32 %s1806_s27, 4  ;;  %s128_s19 = sshll.u32 %s1807_s0, 4  ;;  %s101_s29 = int_to_ptr.vmem [resolvable:$true] %s100_s29  ;;  %s1951_s19 = int_to_ptr.vmem [resolvable:$true] %s128_s19 }
  0x33   :  { %s1614_s22 = scalar_lea.hbm %s2254_s8, 1024 }
  0x34   :  { %p1615_p2 = scmp.ne.s32.totalorder %s2254_s8, %s1614_s22  ;;  %p1618_p3 = scmp.lt.u32.totalorder %s1614_s22, %s2254_s8 }
  0x36   :  { %p1620_p4 = pnand %p1618_p3, %p1615_p2 }
  0x38   :  { %1623 = shalt.err (!%p1620_p4)
}
  0x39   :  { %s1624_s4 = scalar_lea.vmem %s101_s29, 1024  ;;  %p1629_p6 = scmp.lt.s32.totalorder %s101_s29, %s101_s29 }
  0x3a   :  { %p1625_p5 = scmp.ne.s32.totalorder %s101_s29, %s1624_s4  ;;  %p1630_p7 = scmp.lt.s32.totalorder %s1624_s4, %s1624_s4 }
  0x3c   :  { %p1631_p8 = por %p1630_p7, %p1629_p6 }
  0x3e   :  { %p1632_p9 = pnand %p1631_p8, %p1625_p5 }
  0x40   :  { %1635 = shalt.err (!%p1632_p9)
}
  0x41   :  { %106 = dma.hbm_to_vmem [thread:$0]  %s2254_s8, 1024, %s101_s29, [#allocation12], %s1804_s25, %s1804_s25, %s1805_s26  }
  0x42   :  { %s1636_s18 = scalar_lea.hbm %s2258_s12, 1024 }
  0x43   :  { %p1637_p10 = scmp.ne.s32.totalorder %s2258_s12, %s1636_s18  ;;  %p1640_p11 = scmp.lt.u32.totalorder %s1636_s18, %s2258_s12 }
  0x45   :  { %p1642_p12 = pnand %p1640_p11, %p1637_p10 }
  0x47   :  { %1645 = shalt.err (!%p1642_p12)
}
  0x48   :  { %s1646_s2 = scalar_lea.vmem %s1951_s19, 1024  ;;  %p1651_p0 = scmp.lt.s32.totalorder %s1951_s19, %s1951_s19 }
  0x49   :  { %p1647_p13 = scmp.ne.s32.totalorder %s1951_s19, %s1646_s2  ;;  %p1652_p1 = scmp.lt.s32.totalorder %s1646_s2, %s1646_s2 }
  0x4b   :  { %p1653_p2 = por %p1652_p1, %p1651_p0 }
  0x4d   :  { %p1654_p3 = pnand %p1653_p2, %p1647_p13 }
  0x4f   :  { %1657 = shalt.err (!%p1654_p3)
}
  0x50   :  { %134 = dma.hbm_to_vmem [thread:$0]  %s2258_s12, 1024, %s1951_s19, [#allocation15], %s1804_s25, %s1804_s25, %s1805_s26  }
  0x51   :  { %s1808_s23 = smov [#allocation2]   ;;  %s1809_s4 = smov [#allocation7]  }
  0x52   :  { %s34_s24 = sshll.u32 %s1808_s23, 4  ;;  %s60_s30 = sshll.u32 %s1809_s4, 4  ;;  %s35_s24 = int_to_ptr.vmem [resolvable:$true] %s34_s24  ;;  %s1988_s30 = int_to_ptr.vmem [resolvable:$true] %s60_s30 }
  0x53   :  { %s2274_s27 = sld [smem:[#allocation24_spill]] }
  0x59   :  { %s1658_s18 = scalar_lea.hbm %s2274_s27, 128 }
  0x5a   :  { %p1659_p4 = scmp.ne.s32.totalorder %s2274_s27, %s1658_s18  ;;  %p1662_p5 = scmp.lt.u32.totalorder %s1658_s18, %s2274_s27 }
  0x5c   :  { %p1664_p6 = pnand %p1662_p5, %p1659_p4 }
  0x5e   :  { %1667 = shalt.err (!%p1664_p6)
}
  0x5f   :  { %s1668_s12 = scalar_lea.vmem %s35_s24, 128  ;;  %p1673_p8 = scmp.lt.s32.totalorder %s35_s24, %s35_s24 }
  0x60   :  { %p1669_p7 = scmp.ne.s32.totalorder %s35_s24, %s1668_s12  ;;  %p1674_p9 = scmp.lt.s32.totalorder %s1668_s12, %s1668_s12 }
  0x62   :  { %p1675_p10 = por %p1674_p9, %p1673_p8 }
  0x64   :  { %p1676_p11 = pnand %p1675_p10, %p1669_p7 }
  0x66   :  { %1679 = shalt.err (!%p1676_p11)
}
  0x67   :  { %40 = dma.hbm_to_vmem [thread:$0]  %s2274_s27, 128, %s35_s24, [#allocation3], %s1804_s25, %s1804_s25, %s1805_s26  }
  0x68   :  { %s1680_s23 = scalar_lea.hbm %s2249_s3, 256 }
  0x69   :  { %p1681_p12 = scmp.ne.s32.totalorder %s2249_s3, %s1680_s23  ;;  %p1684_p13 = scmp.lt.u32.totalorder %s1680_s23, %s2249_s3 }
  0x6b   :  { %p1686_p0 = pnand %p1684_p13, %p1681_p12 }
  0x6d   :  { %1689 = shalt.err (!%p1686_p0)
}
  0x6e   :  { %s1690_s0 = scalar_lea.vmem %s1988_s30, 256  ;;  %p1695_p2 = scmp.lt.s32.totalorder %s1988_s30, %s1988_s30 }
  0x6f   :  { %p1691_p1 = scmp.ne.s32.totalorder %s1988_s30, %s1690_s0  ;;  %p1696_p3 = scmp.lt.s32.totalorder %s1690_s0, %s1690_s0 }
  0x71   :  { %p1697_p4 = por %p1696_p3, %p1695_p2 }
  0x73   :  { %p1698_p5 = pnand %p1697_p4, %p1691_p1 }
  0x75   :  { %1701 = shalt.err (!%p1698_p5)
}
  0x76   :  { %s1810_s24 = smov 128   ;;  %s1811_s27 = smov 8  }
  0x77   :  { %66 = dma.hbm_to_vmem [thread:$0]  %s2249_s3, 256, %s1988_s30, [#allocation6], %s1810_s24, %s1810_s24, %s1811_s27  }
  0x78   :  { %s1812_s22 = smov [#allocation10]   ;;  %s1813_s19 = smov [#allocation13]  }
  0x79   :  { %s86_s12 = sshll.u32 %s1812_s22, 4  ;;  %s114_s2 = sshll.u32 %s1813_s19, 4  ;;  %s87_s12 = int_to_ptr.vmem [resolvable:$true] %s86_s12  ;;  %s2025_s2 = int_to_ptr.vmem [resolvable:$true] %s114_s2 }
  0x7a   :  { %s1702_s23 = scalar_lea.hbm %s2252_s6, 1024 }
  0x7b   :  { %p1703_p6 = scmp.ne.s32.totalorder %s2252_s6, %s1702_s23  ;;  %p1706_p7 = scmp.lt.u32.totalorder %s1702_s23, %s2252_s6 }
  0x7d   :  { %p1708_p8 = pnand %p1706_p7, %p1703_p6 }
  0x7f   :  { %1711 = shalt.err (!%p1708_p8)
}
  0x80   :  { %s1712_s3 = scalar_lea.vmem %s87_s12, 1024  ;;  %p1717_p10 = scmp.lt.s32.totalorder %s87_s12, %s87_s12 }
  0x81   :  { %p1713_p9 = scmp.ne.s32.totalorder %s87_s12, %s1712_s3  ;;  %p1718_p11 = scmp.lt.s32.totalorder %s1712_s3, %s1712_s3 }
  0x83   :  { %p1719_p12 = por %p1718_p11, %p1717_p10 }
  0x85   :  { %p1720_p13 = pnand %p1719_p12, %p1713_p9 }
  0x87   :  { %1723 = shalt.err (!%p1720_p13)
}
  0x88   :  { %92 = dma.hbm_to_vmem [thread:$0]  %s2252_s6, 1024, %s87_s12, [#allocation9], %s1804_s25, %s1804_s25, %s1805_s26  }
  0x89   :  { %s1724_s22 = scalar_lea.hbm %s2256_s10, 1024 }
  0x8a   :  { %p1725_p0 = scmp.ne.s32.totalorder %s2256_s10, %s1724_s22  ;;  %p1728_p1 = scmp.lt.u32.totalorder %s1724_s22, %s2256_s10 }
  0x8c   :  { %p1730_p2 = pnand %p1728_p1, %p1725_p0 }
  0x8e   :  { %1733 = shalt.err (!%p1730_p2)
}
  0x8f   :  { %s1734_s4 = scalar_lea.vmem %s2025_s2, 1024  ;;  %p1739_p4 = scmp.lt.s32.totalorder %s2025_s2, %s2025_s2 }
  0x90   :  { %p1735_p3 = scmp.ne.s32.totalorder %s2025_s2, %s1734_s4  ;;  %p1740_p5 = scmp.lt.s32.totalorder %s1734_s4, %s1734_s4 }
  0x92   :  { %p1741_p6 = por %p1740_p5, %p1739_p4 }
  0x94   :  { %p1742_p7 = pnand %p1741_p6, %p1735_p3 }
  0x96   :  { %1745 = shalt.err (!%p1742_p7)
}
  0x97   :  { %120 = dma.hbm_to_vmem [thread:$0]  %s2256_s10, 1024, %s2025_s2, [#allocation12], %s1804_s25, %s1804_s25, %s1805_s26  }
  0x98   :  { %s1814_s28 = smov [#allocation16]   ;;  %s1746_s30 = scalar_lea.hbm %s2262_s16, 1024 }
  0x99   :  { %s146_s1 = sshll.u32 %s1814_s28, 4  ;;  %p1747_p8 = scmp.ne.s32.totalorder %s2262_s16, %s1746_s30  ;;  %s147_s1 = int_to_ptr.vmem [resolvable:$true] %s146_s1 }
  0x9a   :  { %p1750_p9 = scmp.lt.u32.totalorder %s1746_s30, %s2262_s16 }
  0x9c   :  { %p1752_p10 = pnand %p1750_p9, %p1747_p8 }
  0x9e   :  { %1755 = shalt.err (!%p1752_p10)
}
  0x9f   :  { %s1756_s19 = scalar_lea.vmem %s147_s1, 1024  ;;  %p1761_p12 = scmp.lt.s32.totalorder %s147_s1, %s147_s1 }
  0xa0   :  { %p1757_p11 = scmp.ne.s32.totalorder %s147_s1, %s1756_s19  ;;  %p1762_p13 = scmp.lt.s32.totalorder %s1756_s19, %s1756_s19 }
  0xa2   :  { %p1763_p0 = por %p1762_p13, %p1761_p12 }
  0xa4   :  { %p1764_p1 = pnand %p1763_p0, %p1757_p11 }
  0xa6   :  { %1767 = shalt.err (!%p1764_p1)
}
  0xa7   :  { %152 = dma.hbm_to_vmem [thread:$0]  %s2262_s16, 1024, %s147_s1, [#allocation15], %s1804_s25, %s1804_s25, %s1805_s26  }
  0xa8   :  { %1790 = dma.done.wait [#allocation3], 128  }
  0xa9   :  { %1791 = vsyncadd [#allocation3], 4294967168 }
  0xaa   :  { %1792 = dma.done.wait [#allocation6], 384  }
  0xab   :  { %1793 = vsyncadd [#allocation6], 4294966912 }
  0xac   :  { %1794 = dma.done.wait [#allocation9], 2048  }
  0xad   :  { %1795 = vsyncadd [#allocation9], 4294965248 }
  0xae   :  { %1796 = dma.done.wait [#allocation12], 2048  }
  0xaf   :  { %1797 = vsyncadd [#allocation12], 4294965248 }
  0xb0   :  { %1798 = dma.done.wait [#allocation15], 2048  }
  0xb1   :  { %1799 = vsyncadd [#allocation15], 4294965248  ;;  %v1815_v0 = vmov 0.0   ;;  %vm1816_vm0 = vmmov 0   ;;  %v1496_v1 = vld [vmem:[#allocation8] sm:$0xff]   ;;  %v1497_v2 = vld [vmem:[#allocation8 + $0x8] sm:$0xff]  }
  0xb2   :  { %1320 = vmatprep.subr.bf16.mxu0 %v1815_v0  ;;  %1336 = vmatprep.mubr.msk.bf16.mxu0 %vm1816_vm0, %v1815_v0  ;;  %v1498_v3 = vld [vmem:[#allocation8 + $0x10] sm:$0xff]   ;;  %v1505_v4 = vld [vmem:[#allocation10] sm:$0xff]   ;;  %v1499_v5 = vld [vmem:[#allocation8 + $0x18] sm:$0xff]   ;;  %s2275_s26 = sld [smem:[#allocation26_spill]]  ;;  %v1817_v19 = vmov 0   ;;  %vm442_vm1 = vcmask 130048  }
  0xb3   :  { %1340 = vmatprep.subr.bf16.mxu1 %v1815_v0  ;;  %1356 = vmatprep.mubr.msk.bf16.mxu1 %vm1816_vm0, %v1815_v0  ;;  %v1506_v6 = vld [vmem:[#allocation10 + $0x8] sm:$0xff]   ;;  %v1500_v7 = vld [vmem:[#allocation8 + $0x20] sm:$0xff]   ;;  %v1507_v8 = vld [vmem:[#allocation10 + $0x10] sm:$0xff]  }
  0xb4   :  { %1321 = vmatpush3.bf16.msra.mxu0 %v1496_v1  ;;  %1341 = vmatpush3.bf16.msra.mxu1 %v1505_v4  ;;  %v1501_v9 = vld [vmem:[#allocation8 + $0x28] sm:$0xff]   ;;  %v1508_v10 = vld [vmem:[#allocation10 + $0x18] sm:$0xff]   ;;  %v1502_v11 = vld [vmem:[#allocation8 + $0x30] sm:$0xff]  }
  0xb5   :  { %1322 = vmatprep.subr.bf16.mxu0 %v1815_v0  ;;  %1342 = vmatprep.subr.bf16.mxu1 %v1815_v0  ;;  %v1503_v12 = vld [vmem:[#allocation8 + $0x38] sm:$0xff]   ;;  %v1504_v13 = vld [vmem:[#allocation2] sm:$0xff]   ;;  %v1510_v15 = vld [vmem:[#allocation10 + $0x28] sm:$0xff]  }
  0xb6   :  { %v1509_v14 = vld [vmem:[#allocation10 + $0x20] sm:$0xff]   ;;  %v1511_v16 = vld [vmem:[#allocation10 + $0x30] sm:$0xff]   ;;  %v1512_v17 = vld [vmem:[#allocation10 + $0x38] sm:$0xff]   ;;  %1495 = vset.pattern.permute.xlu0 %v1817_v19 }
  0xb7   :  { %v1183_v21 = vld [vmem:[%s2251_s5] ss:$0 sm:$0xff]  ;;  %v1515_v32 = vld [vmem:[#allocation11 + $0x8] sm:$0xff]   ;;  %v1516_v33 = vld [vmem:[#allocation11 + $0x10] sm:$0xff]  }
  0xb8   :  { %1323 = vmatpush3.bf16.msra.mxu0 %v1497_v2  ;;  %1343 = vmatpush3.bf16.msra.mxu1 %v1506_v6  ;;  %v183_v18 = vld [vmem:[%s2275_s26] sm:$0xff]  ;;  %v184_v20 = vld [vmem:[%s2275_s26 + $0x8] sm:$0xff]  ;;  %v1517_v34 = vld [vmem:[#allocation11 + $0x18] sm:$0xff]  }
  0xb9   :  { %1324 = vmatprep.subr.bf16.mxu0 %v1815_v0  ;;  %1344 = vmatprep.subr.bf16.mxu1 %v1815_v0  ;;  %v1514_v31 = vld [vmem:[#allocation11] sm:$0xff]   ;;  %v1519_v36 = vld [vmem:[#allocation11 + $0x28] sm:$0xff]   ;;  %v1520_v52 = vld [vmem:[#allocation11 + $0x30] sm:$0xff]  }
  0xba   :  { %426 = vperm.xlu0 %1495, %v183_v18   ;;  %v1518_v35 = vld [vmem:[#allocation11 + $0x20] sm:$0xff]   ;;  %v2127_v51 = vld [vmem:[#allocation5] sm:$0xff]   ;;  %v1521_v53 = vld [vmem:[#allocation11 + $0x38] sm:$0xff]  }
  0xbb   :  { %v1193_v37 = vld [vmem:[%s2253_s7] ss:$0 sm:$0xff] }
  0xbc   :  { %1325 = vmatpush3.bf16.msra.mxu0 %v1498_v3  ;;  %1345 = vmatpush3.bf16.msra.mxu1 %v1507_v8  ;;  %v1204_v61 = vld [vmem:[%s2255_s9] ss:$0 sm:$0xff] }
  0xbd   :  { %1326 = vmatprep.subr.bf16.mxu0 %v1815_v0  ;;  %1346 = vmatprep.subr.bf16.mxu1 %v1815_v0 }
  0xbe   :  { %431 = vperm.xlu0 %1495, %v184_v20  }
  0xc0   :  { %1327 = vmatpush3.bf16.msra.mxu0 %v1499_v5  ;;  %1347 = vmatpush3.bf16.msra.mxu1 %v1508_v10  ;;  %v1522_v10 = vld [vmem:[#allocation13] sm:$0xff]  }
  0xc1   :  { %1328 = vmatprep.subr.bf16.mxu0 %v1815_v0  ;;  %1348 = vmatprep.subr.bf16.mxu1 %v1815_v0 }
  0xc4   :  { %1329 = vmatpush3.bf16.msra.mxu0 %v1500_v7  ;;  %1349 = vmatpush3.bf16.msra.mxu1 %v1509_v14  ;;  %v1526_v14 = vld [vmem:[#allocation13 + $0x20] sm:$0xff]  }
  0xc5   :  { %1330 = vmatprep.subr.bf16.mxu0 %v1815_v0  ;;  %1350 = vmatprep.subr.bf16.mxu1 %v1815_v0 }
  0xc8   :  { %1331 = vmatpush3.bf16.msra.mxu0 %v1501_v9  ;;  %1351 = vmatpush3.bf16.msra.mxu1 %v1510_v15  ;;  %v1527_v15 = vld [vmem:[#allocation13 + $0x28] sm:$0xff]  }
  0xc9   :  { %1332 = vmatprep.subr.bf16.mxu0 %v1815_v0  ;;  %1352 = vmatprep.subr.bf16.mxu1 %v1815_v0 }
  0xcc   :  { %1333 = vmatpush3.bf16.msra.mxu0 %v1502_v11  ;;  %1353 = vmatpush3.bf16.msra.mxu1 %v1511_v16  ;;  %v1523_v11 = vld [vmem:[#allocation13 + $0x8] sm:$0xff]   ;;  %v1528_v16 = vld [vmem:[#allocation13 + $0x30] sm:$0xff]  }
  0xcd   :  { %1334 = vmatprep.subr.bf16.mxu0 %v1815_v0  ;;  %1354 = vmatprep.subr.bf16.mxu1 %v1815_v0 }
  0xd0   :  { %1335 = vmatpush3.bf16.msra.mxu0 %v1503_v12  ;;  %1355 = vmatpush3.bf16.msra.mxu1 %v1512_v17  ;;  %v1524_v12 = vld [vmem:[#allocation13 + $0x10] sm:$0xff]   ;;  %v1529_v17 = vld [vmem:[#allocation13 + $0x38] sm:$0xff]  }
  0xd1   :  { %1360 = vmatprep.subr.bf16.mxu0 %v1815_v0  ;;  %1366 = vmatprep.subr.bf16.mxu1 %v1815_v0 }
  0xd3   :  { %1337 = vmatmul.mubr.bf16.vlgmr.msra.gmra.mrb[0].mxu0 %v1504_v13  ;;  %v1525_v13 = vld [vmem:[#allocation13 + $0x18] sm:$0xff]  }
  0xd4   :  { %1362 = vmatprep.mubr.msk.bf16.mxu0 %vm1816_vm0, %v1815_v0 }
 0x139   :  { %v2121_v44 = vpop.permute.xlu0 %426 }
 0x13d   :  { %v2123_v47 = vpop.permute.xlu0 %431 }
 0x1a6   :  { %v317_v22 = vpop.f32.mrb[0].mxu0 }
 0x1a7   :  { %v318_v23 = vadd.f32 %v1183_v21, %v317_v22  ;;  %v1338_v24 = vpop.f32.mrb[1].mxu0 }
 0x1a8   :  { %v320_v25 = vpop.f32.mrb[2].mxu0 }
 0x1a9   :  { %v321_v26 = vadd.f32 %v1183_v21, %v320_v25  ;;  %v1339_v27 = vpop.f32.mrb[3].mxu0  ;;  %1554 = vtanh.f32 %v318_v23  ;;  %v1530_v25 = vld [vmem:[#allocation14] sm:$0xff]  }
 0x1aa   :  { %v1532_v27 = vld [vmem:[#allocation14 + $0x10] sm:$0xff]  }
 0x1ab   :  { %1556 = vtanh.f32 %v321_v26  ;;  %v1531_v26 = vld [vmem:[#allocation14 + $0x8] sm:$0xff]  }
 0x1b3   :  { %v1555_v28 = vpop.eup %1554 }
 0x1b5   :  { %v1557_v29 = vpop.eup %1556 }
 0x1b6   :  { %v326_v30 = vpack.c.bf16 %v1557_v29, %v1555_v28  ;;  %v1533_v28 = vld [vmem:[#allocation14 + $0x18] sm:$0xff]   ;;  %v1534_v29 = vld [vmem:[#allocation14 + $0x20] sm:$0xff]  }
 0x1b8   :  { %1357 = vmatmul.mubr.bf16.vlgmr.msra.gmra.mrb[0].mxu1 %v326_v30  ;;  %v1535_v30 = vld [vmem:[#allocation14 + $0x28] sm:$0xff]  }
 0x1b9   :  { %1382 = vmatprep.mubr.msk.bf16.mxu1 %vm1816_vm0, %v1815_v0  ;;  %1367 = vmatpush3.bf16.msra.mxu1 %v1514_v31  ;;  %v1214_v31 = vld [vmem:[%s2257_s11] ss:$0 sm:$0xff] }
 0x1ba   :  { %1368 = vmatprep.subr.bf16.mxu1 %v1815_v0 }
 0x1bd   :  { %1369 = vmatpush3.bf16.msra.mxu1 %v1515_v32 }
 0x1be   :  { %1370 = vmatprep.subr.bf16.mxu1 %v1815_v0 }
 0x1c1   :  { %1371 = vmatpush3.bf16.msra.mxu1 %v1516_v33 }
 0x1c2   :  { %1372 = vmatprep.subr.bf16.mxu1 %v1815_v0 }
 0x1c5   :  { %1373 = vmatpush3.bf16.msra.mxu1 %v1517_v34 }
 0x1c6   :  { %1374 = vmatprep.subr.bf16.mxu1 %v1815_v0 }
 0x1c9   :  { %1375 = vmatpush3.bf16.msra.mxu1 %v1518_v35 }
 0x1ca   :  { %1376 = vmatprep.subr.bf16.mxu1 %v1815_v0 }
 0x1cd   :  { %1377 = vmatpush3.bf16.msra.mxu1 %v1519_v36 }
 0x1ce   :  { %1378 = vmatprep.subr.bf16.mxu1 %v1815_v0 }
 0x1d1   :  { %1379 = vmatpush3.bf16.msra.mxu1 %v1520_v52  ;;  %v1543_v52 = vld [vmem:[%s2260_s14 + $0x28] sm:$0xff]  }
 0x1d2   :  { %1380 = vmatprep.subr.bf16.mxu1 %v1815_v0 }
 0x1d5   :  { %1381 = vmatpush3.bf16.msra.mxu1 %v1521_v53 }
 0x1d6   :  { %1418 = vmatprep.subr.bf16.mxu1 %v1815_v0 }
 0x28b   :  { %v415_v38 = vpop.f32.mrb[0].mxu1 }
 0x28c   :  { %v416_v39 = vadd.f32 %v1193_v37, %v415_v38  ;;  %v1358_v40 = vpop.f32.mrb[1].mxu1 }
 0x28d   :  { %v418_v41 = vpop.f32.mrb[2].mxu1 }
 0x28e   :  { %1558 = vtanh.f32 %v416_v39  ;;  %v419_v42 = vadd.f32 %v1193_v37, %v418_v41  ;;  %v1359_v43 = vpop.f32.mrb[3].mxu1 }
 0x28f   :  { %v1536_v43 = vld [vmem:[#allocation14 + $0x30] sm:$0xff]  }
 0x290   :  { %1560 = vtanh.f32 %v419_v42 }
 0x298   :  { %v1559_v45 = vpop.eup %1558 }
 0x299   :  { %v434_v49 = vmul.f32 %v1559_v45, %v2121_v44  ;;  %v1537_v45 = vld [vmem:[#allocation14 + $0x38] sm:$0xff]  }
 0x29a   :  { %v1561_v46 = vpop.eup %1560 }
 0x29b   :  { %v435_v48 = vmul.f32 %v1561_v46, %v2123_v47  ;;  %v1538_v46 = vld [vmem:[%s2260_s14] sm:$0xff]  }
 0x29d   :  { %v436_v50 = vpack.c.bf16 %v435_v48, %v434_v49  ;;  %v1539_v48 = vld [vmem:[%s2260_s14 + $0x8] sm:$0xff]   ;;  %v1540_v49 = vld [vmem:[%s2260_s14 + $0x10] sm:$0xff]  }
 0x29f   :  { %1361 = vmatpush3.bf16.msra.mxu0 %v436_v50  ;;  %v1541_v50 = vld [vmem:[%s2260_s14 + $0x18] sm:$0xff]  }
 0x2a0   :  { %1386 = vmatprep.subr.bf16.mxu0 %v1815_v0 }
 0x2a2   :  { %1363 = vmatmul.mubr.msk.bf16.vlgmr.msra.gmra.mrb[4].mxu0 %vm442_vm1, %v2127_v51 }
 0x2a3   :  { %1388 = vmatprep.mubr.msk.bf16.mxu0 %vm1816_vm0, %v1815_v0 }
 0x375   :  { %v480_v54 = vpop.f32.mrb[4].mxu0 }
 0x376   :  { %v1364_v55 = vpop.f32.mrb[5].mxu0  ;;  %v487_v57 = vmul.f32 %v480_v54, %v2121_v44 }
 0x377   :  { %v483_v56 = vpop.f32.mrb[6].mxu0 }
 0x378   :  { %v488_v58 = vmul.f32 %v483_v56, %v2123_v47  ;;  %v1365_v59 = vpop.f32.mrb[7].mxu0 }
 0x37a   :  { %v489_v60 = vpack.c.bf16 %v488_v58, %v487_v57 }
 0x37c   :  { %1383 = vmatmul.mubr.bf16.vlgmr.msra.gmra.mrb[4].mxu1 %v489_v60  ;;  %v1544_v60 = vld [vmem:[%s2260_s14 + $0x30] sm:$0xff]  }
 0x37d   :  { %1434 = vmatprep.mubr.msk.bf16.mxu1 %vm1816_vm0, %v1815_v0  ;;  %1419 = vmatpush3.bf16.msra.mxu1 %v1530_v25 }
 0x37e   :  { %1420 = vmatprep.subr.bf16.mxu1 %v1815_v0 }
 0x381   :  { %1421 = vmatpush3.bf16.msra.mxu1 %v1531_v26 }
 0x382   :  { %1422 = vmatprep.subr.bf16.mxu1 %v1815_v0 }
 0x385   :  { %1423 = vmatpush3.bf16.msra.mxu1 %v1532_v27 }
 0x386   :  { %1424 = vmatprep.subr.bf16.mxu1 %v1815_v0 }
 0x389   :  { %1425 = vmatpush3.bf16.msra.mxu1 %v1533_v28 }
 0x38a   :  { %1426 = vmatprep.subr.bf16.mxu1 %v1815_v0 }
 0x38d   :  { %1427 = vmatpush3.bf16.msra.mxu1 %v1534_v29 }
 0x38e   :  { %1428 = vmatprep.subr.bf16.mxu1 %v1815_v0 }
 0x391   :  { %1429 = vmatpush3.bf16.msra.mxu1 %v1535_v30 }
 0x392   :  { %1430 = vmatprep.subr.bf16.mxu1 %v1815_v0 }
 0x395   :  { %1431 = vmatpush3.bf16.msra.mxu1 %v1536_v43 }
 0x396   :  { %1432 = vmatprep.subr.bf16.mxu1 %v1815_v0 }
 0x399   :  { %1433 = vmatpush3.bf16.msra.mxu1 %v1537_v45 }
 0x39a   :  { %1458 = vmatprep.subr.bf16.mxu1 %v1815_v0 }
 0x44f   :  { %v595_v62 = vpop.f32.mrb[4].mxu1 }
 0x450   :  { %v596_v63 = vadd.f32 %v1204_v61, %v595_v62  ;;  %v1384_v1 = vpop.f32.mrb[5].mxu1  ;;  %v1548_v62 = vld [vmem:[#allocation16 + $0x10] sm:$0xff]  }
 0x451   :  { %v598_v2 = vpop.f32.mrb[6].mxu1  ;;  %v1224_v1 = vld [vmem:[%s2259_s13] ss:$0 sm:$0xff] }
 0x452   :  { %v602_v3 = vmax.f32 %v596_v63, 0.0  ;;  %v599_v4 = vadd.f32 %v1204_v61, %v598_v2  ;;  %v1385_v5 = vpop.f32.mrb[7].mxu1  ;;  %v1545_v61 = vld [vmem:[%s2260_s14 + $0x38] sm:$0xff]  }
 0x453   :  { %v1549_v63 = vld [vmem:[#allocation16 + $0x18] sm:$0xff]  }
 0x454   :  { %v603_v6 = vmax.f32 %v599_v4, 0.0  ;;  %v604_v7 = vmul.f32 %v602_v3, %v2121_v44 }
 0x456   :  { %v605_v8 = vmul.f32 %v603_v6, %v2123_v47 }
 0x458   :  { %v606_v9 = vpack.c.bf16 %v605_v8, %v604_v7 }
 0x45a   :  { %1387 = vmatpush3.bf16.msra.mxu0 %v606_v9 }
 0x45b   :  { %1392 = vmatprep.subr.bf16.mxu0 %v1815_v0 }
 0x45d   :  { %1389 = vmatmul.mubr.msk.bf16.vlgmr.msra.gmra.mrb[8].mxu0 %vm442_vm1, %v2127_v51 }
 0x45e   :  { %1393 = vmatpush3.bf16.msra.mxu0 %v1522_v10  ;;  %1408 = vmatprep.mubr.msk.bf16.mxu0 %vm1816_vm0, %v1815_v0 }
 0x45f   :  { %1394 = vmatprep.subr.bf16.mxu0 %v1815_v0 }
 0x462   :  { %1395 = vmatpush3.bf16.msra.mxu0 %v1523_v11  ;;  %v1550_v11 = vld [vmem:[#allocation16 + $0x20] sm:$0xff]  }
 0x463   :  { %1396 = vmatprep.subr.bf16.mxu0 %v1815_v0 }
 0x466   :  { %1397 = vmatpush3.bf16.msra.mxu0 %v1524_v12  ;;  %v1551_v12 = vld [vmem:[#allocation16 + $0x28] sm:$0xff]  }
 0x467   :  { %1398 = vmatprep.subr.bf16.mxu0 %v1815_v0 }
 0x46a   :  { %1399 = vmatpush3.bf16.msra.mxu0 %v1525_v13  ;;  %v1552_v13 = vld [vmem:[#allocation16 + $0x30] sm:$0xff]  }
 0x46b   :  { %1400 = vmatprep.subr.bf16.mxu0 %v1815_v0 }
 0x46e   :  { %1401 = vmatpush3.bf16.msra.mxu0 %v1526_v14  ;;  %v1553_v14 = vld [vmem:[#allocation16 + $0x38] sm:$0xff]  }
 0x46f   :  { %1402 = vmatprep.subr.bf16.mxu0 %v1815_v0 }
 0x472   :  { %1403 = vmatpush3.bf16.msra.mxu0 %v1527_v15  ;;  %v1233_v15 = vld [vmem:[%s2261_s15] ss:$0 sm:$0xff]  ;;  %s1818_s15 = smov [#allocation17]  }
 0x473   :  { %1404 = vmatprep.subr.bf16.mxu0 %v1815_v0  ;;  %s1167_s6 = sshll.u32 %s1818_s15, 4  ;;  %s1168_s6 = int_to_ptr.vmem [resolvable:$true] %s1167_s6 }
 0x474   :  { %p1773_p3 = scmp.lt.s32.totalorder %s1168_s6, %s1168_s6 }
 0x476   :  { %1405 = vmatpush3.bf16.msra.mxu0 %v1528_v16 }
 0x477   :  { %1406 = vmatprep.subr.bf16.mxu0 %v1815_v0 }
 0x47a   :  { %1407 = vmatpush3.bf16.msra.mxu0 %v1529_v17 }
 0x47b   :  { %1412 = vmatprep.subr.bf16.mxu0 %v1815_v0 }
 0x530   :  { %v641_v18 = vpop.f32.mrb[8].mxu0 }
 0x531   :  { %v1390_v19 = vpop.f32.mrb[9].mxu0  ;;  %v648_v21 = vmul.f32 %v641_v18, %v2121_v44 }
 0x532   :  { %v644_v20 = vpop.f32.mrb[10].mxu0 }
 0x533   :  { %v649_v22 = vmul.f32 %v644_v20, %v2123_v47  ;;  %v1391_v23 = vpop.f32.mrb[11].mxu0 }
 0x535   :  { %v650_v24 = vpack.c.bf16 %v649_v22, %v648_v21 }
 0x537   :  { %1409 = vmatmul.mubr.bf16.vlgmr.msra.gmra.mrb[12].mxu0 %v650_v24 }
 0x538   :  { %1414 = vmatprep.mubr.msk.bf16.mxu0 %vm1816_vm0, %v1815_v0 }
 0x60a   :  { %v756_v32 = vpop.f32.mrb[12].mxu0 }
 0x60b   :  { %v757_v33 = vadd.f32 %v1214_v31, %v756_v32  ;;  %v1410_v34 = vpop.f32.mrb[13].mxu0 }
 0x60c   :  { %v759_v35 = vpop.f32.mrb[14].mxu0 }
 0x60d   :  { %v763_v36 = vmax.f32 %v757_v33, 0.0  ;;  %v760_v37 = vadd.f32 %v1214_v31, %v759_v35  ;;  %v1411_v38 = vpop.f32.mrb[15].mxu0  ;;  %v1156_v31 = vld [vmem:[#allocation7] sm:$0xff]  ;;  %v1157_v33 = vld [vmem:[#allocation7 + $0x8] sm:$0xff] }
 0x60f   :  { %v764_v39 = vmax.f32 %v760_v37, 0.0  ;;  %v765_v40 = vmul.f32 %v763_v36, %v2121_v44 }
 0x611   :  { %v766_v41 = vmul.f32 %v764_v39, %v2123_v47 }
 0x613   :  { %v767_v42 = vpack.c.bf16 %v766_v41, %v765_v40 }
 0x615   :  { %1413 = vmatpush3.bf16.msra.mxu0 %v767_v42 }
 0x616   :  { %1438 = vmatprep.subr.bf16.mxu0 %v1815_v0 }
 0x618   :  { %1415 = vmatmul.mubr.msk.bf16.vlgmr.msra.gmra.mrb[16].mxu0 %vm442_vm1, %v2127_v51  ;;  %v1542_v51 = vld [vmem:[%s2260_s14 + $0x20] sm:$0xff]  }
 0x619   :  { %1454 = vmatprep.mubr.msk.bf16.mxu0 %vm1816_vm0, %v1815_v0  ;;  %1439 = vmatpush3.bf16.msra.mxu0 %v1538_v46 }
 0x61a   :  { %1440 = vmatprep.subr.bf16.mxu0 %v1815_v0 }
 0x61d   :  { %1441 = vmatpush3.bf16.msra.mxu0 %v1539_v48 }
 0x61e   :  { %1442 = vmatprep.subr.bf16.mxu0 %v1815_v0 }
 0x621   :  { %1443 = vmatpush3.bf16.msra.mxu0 %v1540_v49 }
 0x622   :  { %1444 = vmatprep.subr.bf16.mxu0 %v1815_v0 }
 0x625   :  { %1445 = vmatpush3.bf16.msra.mxu0 %v1541_v50 }
 0x626   :  { %1446 = vmatprep.subr.bf16.mxu0 %v1815_v0 }
 0x629   :  { %1447 = vmatpush3.bf16.msra.mxu0 %v1542_v51 }
 0x62a   :  { %1448 = vmatprep.subr.bf16.mxu0 %v1815_v0 }
 0x62d   :  { %1449 = vmatpush3.bf16.msra.mxu0 %v1543_v52 }
 0x62e   :  { %1450 = vmatprep.subr.bf16.mxu0 %v1815_v0 }
 0x631   :  { %1451 = vmatpush3.bf16.msra.mxu0 %v1544_v60 }
 0x632   :  { %1452 = vmatprep.subr.bf16.mxu0 %v1815_v0 }
 0x635   :  { %1453 = vmatpush3.bf16.msra.mxu0 %v1545_v61 }
 0x6eb   :  { %v802_v53 = vpop.f32.mrb[16].mxu0 }
 0x6ec   :  { %v1416_v54 = vpop.f32.mrb[17].mxu0  ;;  %v809_v56 = vmul.f32 %v802_v53, %v2121_v44  ;;  %v1546_v44 = vld [vmem:[#allocation16] sm:$0xff]  }
 0x6ed   :  { %v805_v55 = vpop.f32.mrb[18].mxu0 }
 0x6ee   :  { %v810_v57 = vmul.f32 %v805_v55, %v2123_v47  ;;  %v1417_v58 = vpop.f32.mrb[19].mxu0  ;;  %v1547_v47 = vld [vmem:[#allocation16 + $0x8] sm:$0xff]  }
 0x6f0   :  { %v811_v59 = vpack.c.bf16 %v810_v57, %v809_v56 }
 0x6f2   :  { %1435 = vmatmul.mubr.bf16.vlgmr.msra.gmra.mrb[8].mxu1 %v811_v59 }
 0x6f3   :  { %1474 = vmatprep.mubr.msk.bf16.mxu1 %vm1816_vm0, %v1815_v0  ;;  %1459 = vmatpush3.bf16.msra.mxu1 %v1546_v44 }
 0x6f4   :  { %1460 = vmatprep.subr.bf16.mxu1 %v1815_v0 }
 0x6f7   :  { %1461 = vmatpush3.bf16.msra.mxu1 %v1547_v47 }
 0x6f8   :  { %1462 = vmatprep.subr.bf16.mxu1 %v1815_v0 }
 0x6fb   :  { %1463 = vmatpush3.bf16.msra.mxu1 %v1548_v62 }
 0x6fc   :  { %1464 = vmatprep.subr.bf16.mxu1 %v1815_v0 }
 0x6ff   :  { %1465 = vmatpush3.bf16.msra.mxu1 %v1549_v63 }
 0x700   :  { %1466 = vmatprep.subr.bf16.mxu1 %v1815_v0 }
 0x703   :  { %1467 = vmatpush3.bf16.msra.mxu1 %v1550_v11 }
 0x704   :  { %1468 = vmatprep.subr.bf16.mxu1 %v1815_v0 }
 0x707   :  { %1469 = vmatpush3.bf16.msra.mxu1 %v1551_v12 }
 0x708   :  { %1470 = vmatprep.subr.bf16.mxu1 %v1815_v0 }
 0x70b   :  { %1471 = vmatpush3.bf16.msra.mxu1 %v1552_v13 }
 0x70c   :  { %1472 = vmatprep.subr.bf16.mxu1 %v1815_v0  ;;  %v1242_v0 = vld [vmem:[%s2263_s17] ss:$0 sm:$0xff]  ;;  %s1768_s17 = scalar_lea.vmem %s1168_s6, 256 }
 0x70d   :  { %p1769_p2 = scmp.ne.s32.totalorder %s1168_s6, %s1768_s17  ;;  %p1774_p4 = scmp.lt.s32.totalorder %s1768_s17, %s1768_s17 }
 0x70f   :  { %1473 = vmatpush3.bf16.msra.mxu1 %v1553_v14  ;;  %p1775_p5 = por %p1774_p4, %p1773_p3 }
 0x711   :  { %p1776_p6 = pnand %p1775_p5, %p1769_p2 }
 0x7c5   :  { %v917_v2 = vpop.f32.mrb[8].mxu1 }
 0x7c6   :  { %v918_v3 = vadd.f32 %v1224_v1, %v917_v2  ;;  %v1436_v4 = vpop.f32.mrb[9].mxu1 }
 0x7c7   :  { %v920_v5 = vpop.f32.mrb[10].mxu1 }
 0x7c8   :  { %v921_v6 = vadd.f32 %v1224_v1, %v920_v5  ;;  %v1437_v7 = vpop.f32.mrb[11].mxu1  ;;  %v924_v8 = vmax.f32 %v918_v3, 0.0 }
 0x7ca   :  { %v925_v9 = vmax.f32 %v921_v6, 0.0 }
 0x7cc   :  { %v960_v10 = vpack.c.bf16 %v925_v9, %v924_v8 }
 0x7ce   :  { %1455 = vmatmul.mubr.bf16.vlgmr.msra.gmra.mrb[20].mxu0 %v960_v10 }
 0x8a1   :  { %v1049_v16 = vpop.f32.mrb[20].mxu0 }
 0x8a2   :  { %v1050_v17 = vadd.f32 %v1233_v15, %v1049_v16  ;;  %v1456_v18 = vpop.f32.mrb[21].mxu0 }
 0x8a3   :  { %v1052_v19 = vpop.f32.mrb[22].mxu0 }
 0x8a4   :  { %v1053_v20 = vadd.f32 %v1233_v15, %v1052_v19  ;;  %v1457_v21 = vpop.f32.mrb[23].mxu0  ;;  %1562 = vtanh.f32 %v1050_v17 }
 0x8a6   :  { %1564 = vtanh.f32 %v1053_v20 }
 0x8ae   :  { %v1563_v22 = vpop.eup %1562 }
 0x8b0   :  { %v1565_v23 = vpop.eup %1564 }
 0x8b1   :  { %v1058_v24 = vpack.c.bf16 %v1565_v23, %v1563_v22 }
 0x8b3   :  { %1475 = vmatmul.mubr.bf16.vlgmr.msra.gmra.mrb[12].mxu1 %v1058_v24 }
 0x986   :  { %v1147_v25 = vpop.f32.mrb[12].mxu1 }
 0x987   :  { %v1148_v26 = vadd.f32 %v1242_v0, %v1147_v25  ;;  %v1476_v27 = vpop.f32.mrb[13].mxu1 }
 0x988   :  { %v1150_v28 = vpop.f32.mrb[14].mxu1 }
 0x989   :  { %1566 = vtanh.f32 %v1148_v26  ;;  %v1151_v29 = vadd.f32 %v1242_v0, %v1150_v28  ;;  %v1477_v30 = vpop.f32.mrb[15].mxu1 }
 0x98b   :  { %1568 = vtanh.f32 %v1151_v29 }
 0x993   :  { %v1567_v32 = vpop.eup %1566 }
 0x994   :  { %v1158_v34 = vadd.f32 %v1567_v32, %v1156_v31 }
 0x995   :  { %v1569_v35 = vpop.eup %1568 }
 0x996   :  { %v1159_v36 = vadd.f32 %v1569_v35, %v1157_v33  ;;  %1160 = vst [vmem:[#allocation17] sm:$0xff] %v1158_v34 }
 0x998   :  { %1161 = vst [vmem:[#allocation17 + $0x8] sm:$0xff] %v1159_v36 }
 0x999   :  { %1779 = shalt.err (!%p1776_p6)
}
 0x99a   :  { %s2276_s9 = sld [smem:[#allocation27_spill]] }
 0x9a0   :  { %s1780_s28 = scalar_lea.hbm %s2276_s9, 256 }
 0x9a1   :  { %p1781_p7 = scmp.ne.s32.totalorder %s2276_s9, %s1780_s28  ;;  %p1784_p8 = scmp.lt.u32.totalorder %s1780_s28, %s2276_s9 }
 0x9a3   :  { %p1786_p9 = pnand %p1784_p8, %p1781_p7 }
 0x9a5   :  { %1789 = shalt.err (!%p1786_p9)
}
 0x9a6   :  { %1173 = dma.vmem_to_hbm [thread:$0]  %s1168_s6, 256, %s2276_s9, [#allocation4], %s1810_s24, %s1810_s24, %s1811_s27  }
 0x9a7   :  { %1800 = dma.done.wait [#allocation4], 256  }
 0x9a8   :  { %1801 = vsyncadd [#allocation4], 4294967040 }
 0x9a9   :  { %1177 = vsyncpa [#allocation3], 1 }
 0x9aa   :  { %1178 = vsyncpa [#allocation6], 1 }
 0x9ab   :  { %1179 = vsyncpa [#allocation9], 1 }
 0x9ac   :  { %1180 = vsyncpa [#allocation12], 1 }
 0x9ad   :  { %1181 = vsyncpa [#allocation15], 1 }
 0x9ae   :  { %1182 = vsyncpa [#allocation4], 1 }

</bundles_post_ra>
